<compile_context>
chip_gen: v5e
topology: v5e:2x2
jax: 0.10.0
libtpu: 0.0.40
codegen_flags: <defaults>
</compile_context>

<pallas_src>
import functools

import jax
import jax.numpy as jnp
from jax.experimental import pallas as pl
from jax.experimental.pallas import tpu as pltpu

_INT32_MAX = int(jnp.iinfo(jnp.int32).max)


def _pick_tile(s, candidates):
    # Largest candidate <= S so no block ever exceeds the array extent; for S smaller
    # than the smallest candidate, fall back to the full dim (always a legal block dim).
    for c in candidates:
        if c <= s:
            return c
    return s


def _pad_kernel(x_ref, o_ref, *, idx):
    # Single block: x_ref [B, S] int32, o_ref [B, S] out_dtype (tiny output).
    o_ref[...] = (x_ref[...] == idx).astype(o_ref.dtype)


def _ahead_tile_kernel(x_ref, o_ref, *, idx, tm, tn):
    # x_ref: [1, 1, TN] int32 (columns j*TN .. j*TN+TN of batch b)
    # o_ref: [1, TM, TN] out_dtype
    j = pl.program_id(0)          # column tile (leading, large -> megacore split)
    i = pl.program_id(2)          # row tile (innermost -> input DMA elided)
    row0 = i * tm
    col0 = j * tn

    all_future = col0 >= row0 + tm        # min col in tile > max row in tile
    all_past = col0 + tn <= row0 + 1      # max col in tile <= min row in tile

    @pl.when(all_future)
    def _():
        # Entire tile is strictly above the diagonal: mask == 1 regardless of pad.
        o_ref[...] = jnp.ones((1, tm, tn), o_ref.dtype)

    @pl.when(all_past)
    def _():
        # Entire tile is at/below the diagonal: mask == pad, broadcast over rows.
        pad = (x_ref[0] == idx).astype(o_ref.dtype)                   # [1, TN]
        o_ref[...] = jnp.broadcast_to(pad[None], (1, tm, tn))

    @pl.when(jnp.logical_not(jnp.logical_or(all_future, all_past)))
    def _():
        # Diagonal-crossing tile: single broadcast compare.
        pad = x_ref[0] == idx                                         # [1, TN]
        col = col0 + jax.lax.broadcasted_iota(jnp.int32, (1, tn), 1)  # [1, TN]
        col_eff = jnp.where(pad, _INT32_MAX, col)                     # pad col -> always "future"
        row = row0 + jax.lax.broadcasted_iota(jnp.int32, (tm, 1), 0)  # [TM, 1]
        o_ref[...] = (col_eff > row)[None].astype(o_ref.dtype)


def pad_masking(x, *, pad_or_ahead="ahead", idx=0, out_dtype=jnp.float32):
    """Pallas implementation of PadMasking.forward."""
    x = x.astype(jnp.int32)
    B, S = x.shape

    if pad_or_ahead == "pad":
        # Output is only B*S elements; a single block beats any tiling (launch overhead
        # dominates the work). Full-array block dims are always legal on TPU.
        out = pl.pallas_call(
            functools.partial(_pad_kernel, idx=idx),
            out_shape=jax.ShapeDtypeStruct((B, S), out_dtype),
        )(x)
        return out[:, None, :]            # free layout plumbing: [B, S] -> [B, 1, S]

    elif pad_or_ahead == "ahead":
        tm = _pick_tile(S, (512, 256, 128))
        tn = _pick_tile(S, (2048, 1024, 512, 256, 128))
        x3 = x[:, None, :]                # [B, 1, S]: input block (1,1,TN) is lane-dense
        grid = (pl.cdiv(S, tn), B, pl.cdiv(S, tm))
        return pl.pallas_call(
            functools.partial(_ahead_tile_kernel, idx=idx, tm=tm, tn=tn),
            out_shape=jax.ShapeDtypeStruct((B, S, S), out_dtype),
            grid=grid,
            # grid = (col tile, batch, row tile); row tile innermost so the input block
            # index (b, 0, j) is constant across consecutive steps (DMA elided).
            in_specs=[pl.BlockSpec((1, 1, tn), lambda j, b, i: (b, 0, j))],
            out_specs=pl.BlockSpec((1, tm, tn), lambda j, b, i: (b, i, j)),
            compiler_params=pltpu.CompilerParams(
                dimension_semantics=("parallel", "parallel", "parallel"),
                vmem_limit_bytes=32 * 1024 * 1024),
        )(x3)

    else:
        raise ValueError(f"unknown mode: {pad_or_ahead}")


def _reference(x, *, pad_or_ahead="ahead", idx=0):
    x = x.astype(jnp.int32)
    pad = (x == idx).astype(jnp.float32)[:, None, :]  # [B, 1, S]
    if pad_or_ahead == "pad":
        return pad
    S = x.shape[1]
    look_ahead = 1.0 - jnp.tril(jnp.ones((S, S), jnp.float32))
    return jnp.maximum(look_ahead, pad)


def _check(x):
    out_ahead = jax.block_until_ready(pad_masking(x, pad_or_ahead="ahead", idx=0))
    out_pad = jax.block_until_ready(pad_masking(x, pad_or_ahead="pad", idx=0))
    ref_ahead = _reference(x, pad_or_ahead="ahead", idx=0)
    ref_pad = _reference(x, pad_or_ahead="pad", idx=0)
    B, S = x.shape
    assert out_ahead.shape == (B, S, S) and out_ahead.dtype == jnp.float32
    assert out_pad.shape == (B, 1, S) and out_pad.dtype == jnp.float32
    assert jnp.array_equal(out_ahead, ref_ahead)
    assert jnp.array_equal(out_pad, ref_pad)


if __name__ == "__main__":
    key = jax.random.PRNGKey(0)
    k0, k1, k2, k3 = jax.random.split(key, 4)

    # Small shape consistent with the module (batch=2, seq=8); idx=0 is PAD.
    _check(jax.random.randint(k0, (2, 8), 0, 5, dtype=jnp.int32))
    # Non-128-multiple seq: masked edge tiles, no post-kernel slice copy.
    _check(jax.random.randint(k1, (2, 200), 0, 5, dtype=jnp.int32))
    # Multi-tile grid: hits the all-ones, pad-broadcast and diagonal tile fast paths.
    _check(jax.random.randint(k2, (2, 384), 0, 5, dtype=jnp.int32))
    # Fast paths combined with partial (masked) tail tiles in both row and col.
    _check(jax.random.randint(k3, (2, 640), 0, 5, dtype=jnp.int32))

    print("KERNEL_OK")
</pallas_src>

<mosaic_0001>
module attributes {stable_mosaic.version = 11 : i64} {
  func.func @_ahead_tile_kernel(%arg0: i32, %arg1: i32, %arg2: i32, %arg3: memref<1x1x8xi32, #tpu.memory_space<vmem>>, %arg4: memref<1x8x8xf32, #tpu.memory_space<vmem>>) attributes {dimension_semantics = [#tpu.dimension_semantics<parallel>, #tpu.dimension_semantics<parallel>, #tpu.dimension_semantics<parallel>], iteration_bounds = array<i64: 1, 2, 1>, scalar_prefetch = 0 : i64, scratch_operands = 0 : i64, tpu.core_type = #tpu.core_type<tc>, window_params = [{transform_indices = @transform_0, window_bounds = array<i64: 1, 1, 8>}, {transform_indices = @transform_1, window_bounds = array<i64: 1, 8, 8>}]} {
    %c8_i32 = arith.constant 8 : i32
    %0 = arith.muli %arg2, %c8_i32 : i32
    %c8_i32_0 = arith.constant 8 : i32
    %1 = arith.muli %arg0, %c8_i32_0 : i32
    %c8_i32_1 = arith.constant 8 : i32
    %2 = arith.addi %0, %c8_i32_1 : i32
    %3 = arith.cmpi sge, %1, %2 : i32
    %c8_i32_2 = arith.constant 8 : i32
    %4 = arith.addi %1, %c8_i32_2 : i32
    %c1_i32 = arith.constant 1 : i32
    %5 = arith.addi %0, %c1_i32 : i32
    %6 = arith.cmpi sle, %4, %5 : i32
    %7 = arith.extui %3 : i1 to i32
    %c0_i32 = arith.constant 0 : i32
    %8 = arith.cmpi ne, %7, %c0_i32 : i32
    scf.if %8 {
      %cst = arith.constant 1.000000e+00 : f32
      %15 = vector.broadcast %cst : f32 to vector<1x8x8xf32>
      %c0 = arith.constant 0 : index
      %c0_5 = arith.constant 0 : index
      %c0_6 = arith.constant 0 : index
      %16 = vector.load %arg4[%c0, %c0_5, %c0_6] : memref<1x8x8xf32, #tpu.memory_space<vmem>>, vector<1x8x8xf32>
      tpu.vector_store %arg4[%c0, %c0_5, %c0_6], %15 {strides = array<i32>} : memref<1x8x8xf32, #tpu.memory_space<vmem>>, vector<1x8x8xf32>,
    } else {
    }
    %9 = arith.extui %6 : i1 to i32
    %c0_i32_3 = arith.constant 0 : i32
    %10 = arith.cmpi ne, %9, %c0_i32_3 : i32
    scf.if %10 {
      %c0 = arith.constant 0 : index
      %c0_5 = arith.constant 0 : index
      %c0_6 = arith.constant 0 : index
      %15 = vector.load %arg3[%c0, %c0_5, %c0_6] : memref<1x1x8xi32, #tpu.memory_space<vmem>>, vector<1x1x8xi32>
      %16 = vector.shape_cast %15 : vector<1x1x8xi32> to vector<1x8xi32>
      %c0_i32_7 = arith.constant 0 : i32
      %17 = vector.broadcast %c0_i32_7 : i32 to vector<1x8xi32>
      %18 = arith.cmpi eq, %16, %17 : vector<1x8xi32>
      %19 = arith.extui %18 : vector<1x8xi1> to vector<1x8xi32>
      %20 = arith.sitofp %19 : vector<1x8xi32> to vector<1x8xf32>
      %21 = vector.shape_cast %20 : vector<1x8xf32> to vector<1x1x8xf32>
      %22 = vector.shape_cast %21 : vector<1x1x8xf32> to vector<1x1x8xf32>
      %23 = vector.broadcast %22 : vector<1x1x8xf32> to vector<1x8x8xf32>
      %c0_8 = arith.constant 0 : index
      %c0_9 = arith.constant 0 : index
      %c0_10 = arith.constant 0 : index
      %24 = vector.load %arg4[%c0_8, %c0_9, %c0_10] : memref<1x8x8xf32, #tpu.memory_space<vmem>>, vector<1x8x8xf32>
      tpu.vector_store %arg4[%c0_8, %c0_9, %c0_10], %23 {strides = array<i32>} : memref<1x8x8xf32, #tpu.memory_space<vmem>>, vector<1x8x8xf32>,
    } else {
    }
    %11 = arith.ori %3, %6 : i1
    %true = arith.constant true
    %12 = arith.xori %11, %true : i1
    %13 = arith.extui %12 : i1 to i32
    %c0_i32_4 = arith.constant 0 : i32
    %14 = arith.cmpi ne, %13, %c0_i32_4 : i32
    scf.if %14 {
      %c0 = arith.constant 0 : index
      %c0_5 = arith.constant 0 : index
      %c0_6 = arith.constant 0 : index
      %15 = vector.load %arg3[%c0, %c0_5, %c0_6] : memref<1x1x8xi32, #tpu.memory_space<vmem>>, vector<1x1x8xi32>
      %16 = vector.shape_cast %15 : vector<1x1x8xi32> to vector<1x8xi32>
      %c0_i32_7 = arith.constant 0 : i32
      %17 = vector.broadcast %c0_i32_7 : i32 to vector<1x8xi32>
      %18 = arith.cmpi eq, %16, %17 : vector<1x8xi32>
      %19 = tpu.iota {dimensions = array<i32: 1>} : vector<1x8xi32>
      %20 = vector.broadcast %1 : i32 to vector<1x8xi32>
      %21 = arith.addi %20, %19 : vector<1x8xi32>
      %c2147483647_i32 = arith.constant 2147483647 : i32
      %22 = vector.broadcast %c2147483647_i32 : i32 to vector<1x8xi32>
      %23 = arith.select %18, %22, %21 : vector<1x8xi1>, vector<1x8xi32>
      %24 = tpu.iota {dimensions = array<i32: 0>} : vector<8x1xi32>
      %25 = vector.broadcast %0 : i32 to vector<8x1xi32>
      %26 = arith.addi %25, %24 : vector<8x1xi32>
      %27 = vector.broadcast %23 : vector<1x8xi32> to vector<8x8xi32>
      %28 = vector.broadcast %26 : vector<8x1xi32> to vector<8x8xi32>
      %29 = arith.cmpi sgt, %27, %28 : vector<8x8xi32>
      %30 = vector.shape_cast %29 : vector<8x8xi1> to vector<1x8x8xi1>
      %31 = arith.extui %30 : vector<1x8x8xi1> to vector<1x8x8xi32>
      %32 = arith.sitofp %31 : vector<1x8x8xi32> to vector<1x8x8xf32>
      %c0_8 = arith.constant 0 : index
      %c0_9 = arith.constant 0 : index
      %c0_10 = arith.constant 0 : index
      %33 = vector.load %arg4[%c0_8, %c0_9, %c0_10] : memref<1x8x8xf32, #tpu.memory_space<vmem>>, vector<1x8x8xf32>
      tpu.vector_store %arg4[%c0_8, %c0_9, %c0_10], %32 {strides = array<i32>} : memref<1x8x8xf32, #tpu.memory_space<vmem>>, vector<1x8x8xf32>,
    } else {
    }
    return
  }
  func.func @transform_0(%arg0: i32, %arg1: i32, %arg2: i32) -> (i32, i32, i32) {
    %c0_i32 = arith.constant 0 : i32
    %c0_i32_0 = arith.constant 0 : i32
    return %arg1, %c0_i32, %arg0 : i32, i32, i32
  }
  func.func @transform_1(%arg0: i32, %arg1: i32, %arg2: i32) -> (i32, i32, i32) {
    %c0_i32 = arith.constant 0 : i32
    return %arg1, %arg2, %arg0 : i32, i32, i32
  }
}

</mosaic_0001>

<bundles_post_ra>
// kernel: tpu_custom_call.1
= control target key start
LH: loop header
LB: loop body
LE: loop exit
PB: predicated region body
PF: predicated region fallthrough
CT: control target
= control target key end

     0   :  { %6 = vsyncpa [#allocation3], 0  ;;  %s620_s0 = inlined_call_operand.hbm [shape: s32[2,1,8], index: 0, kind: input, shape index: {}]   ;;  %s621_s1 = inlined_call_operand.hbm [shape: f32[2,8,8], index: 1, kind: output, shape index: {}]  }
   0x1   :  { %8 = vsyncpa [#allocation3 + $0x1], 0 }
   0x2   :  { %9 = vsyncpa [#allocation4], 0 }
   0x3   :  { %11 = vsyncpa [#allocation4 + $0x1], 0  ;;  %s499_s6 = smov 0   ;;  %s501_s7 = smov 0  }
   0x4   :  { %s503_s8 = smov 0   ;;  %s505_s9 = smov 0  }
   0x5   :  { %s507_s10 = smov 0   ;;  %s509_s11 = smov 0  }
   0x6 LB: > { %s299_s12 = sadd.s32 4294967295, %s486_s11   ;;  %s300_s13 = sadd.s32 4294967294, %s486_s11   ;;  %s486_s11 = sphi %s509_s11, %s17_s11   ;;  %s482_s10 = sphi %s507_s10, %s630_s10   ;;  %s478_s9 = sphi %s505_s9, %s629_s9   ;;  %s474_s8 = sphi %s503_s8, %s628_s8   ;;  %s470_s7 = sphi %s501_s7, %s627_s7   ;;  %s466_s6 = sphi %s499_s6, %s626_s6  }
   0x7   : > { %s32_s14 = sadd.s32 1, %s482_s10  ;;  %s45_s15 = sadd.s32 1, %s474_s8 }
   0x8   : > { %p34_p0 = scmp.ge.s32.totalorder %s32_s14, 2  ;;  %p52_p1 = scmp.ne.s32.totalorder %s474_s8, %s470_s7 }
   0x9   : > { %p53_p2 = scmp.eq.s32.totalorder %s486_s11, 0  ;;  %p58_p3 = scmp.ne.s32.totalorder %s470_s7, %s466_s6 }
   0xa   : > { %s632_s14 = smov (%p34_p0, %s32_s14), 0  ;;  %p59_p5 = scmp.eq.s32.totalorder %s299_s12, 0 }
   0xb   : > { %p540_p4 = por %p53_p2, %p52_p1  ;;  %s40_s17 = ssub.s32 %s482_s10, %s632_s14 }
   0xc   : > { %p86_p6 = scmp.eq.s32.totalorder %s299_s12, 1  ;;  %p43_p7 = scmp.eq.s32.totalorder %s40_s17, 0 }
   0xd   : > { %p546_p8 = por %p59_p5, %p58_p3  ;;  %p92_p10 = scmp.eq.s32.totalorder %s300_s13, 1 }
   0xe   : > { %p550_p9 = por %p86_p6, %p52_p1  ;;  %p302_p12 = scmp.ge.s32.totalorder %s486_s11, 2 }
   0xf   : > { %s555_s20 = scalar_select %p43_p7, %s474_s8, %s45_s15  }
  0x10   : > { %p557_p11 = por %p92_p10, %p58_p3  ;;  %p323_p13 = scmp.lt.s32.totalorder %s486_s11, 2 }
  0x11   : > { %s112_s22 = sand.u32 1, %s474_s8   ;;  %s119_s25 = scalar_lea.hbm %s620_s0, %s482_s10 }
  0x12   : > { %s115_s26 = scalar_lea.vmem [#allocation2], %s112_s22  ;;  %s121_s28 = sshll.u32 %s119_s25, 4  ;;  %s122_s28 = int_to_ptr.hbm [resolvable:$true] %s121_s28 }
  0x13   : > { %s123_s27 = sshll.u32 %s115_s26, 4  ;;  %p316_p0 = pnand %p323_p13, %p540_p4  ;;  %s124_s27 = int_to_ptr.vmem [resolvable:$true] %s123_s27 }
  0x14   : > { %p303_p1 = scmp.ge.s32.totalorder %s486_s11, 1  ;;  %p128_p2 = scmp.lt.s32.totalorder %s486_s11, 3 }
  0x15   : > { %s113_s29 = scalar_lea.sflag [#allocation3], %s112_s22 }
  0x16   : > { %318 = dma.hbm_to_vmem [thread:$0]  (!%p316_p0), %s122_s28, 16, %s124_s27, %s113_s29  }
  0x17   : > { %p129_p3 = pnand %p303_p1, %p128_p2 }
  0x18   : > { %s573_s30 = sand.u32 (!%p129_p3), 1, %s470_s7  }
  0x19   : > { %132 = sbr.rel (%p129_p3) target bundleno = 46 (0x2e), region = 24  ;;  %s135_s2 = scalar_lea.sflag (!%p129_p3), [#allocation3], %s573_s30 }
  0x1a   : > { %s137_s3 = scalar_lea.vmem (!%p129_p3), [#allocation2], %s573_s30 }
  0x1e   : > { %457 = dma.done.wait (%p546_p8), %s135_s2, 16  }
  0x1f   : > { %459 = vsyncadd (%p546_p8), %s135_s2, 4294967280  ;;  %v186_v0 = vlaneseq  ;;  %s304_s4 = sshll.u32 %s573_s30, 3  ;;  %s308_s5 = sshll.u32 %s478_s9, 3  ;;  %v184_v2 = vld [vmem:[%s137_s3] sm:$0x1]  ;;  %vm199_vm1 = vcmask 64512  }
  0x20   : > { %s214_s15 = scalar_lea.hbm %s621_s1, %s308_s5  ;;  %vm185_vm0 = vcmp.eq.s32.totalorder %v184_v2, 0  ;;  %s155_s16 = scalar_lea.vmem [#allocation5], %s304_s4  ;;  %v488_v6 = vmov 0.0  }
  0x21   : > { %v187_v1 = vand.u32 127, %v186_v0  ;;  %v192_v3 = vshrl.u32 %v186_v0, 7  ;;  %s216_s17 = sshll.u32 %s155_s16, 4  ;;  %s218_s18 = sshll.u32 %s214_s15, 4  ;;  %s217_s17 = int_to_ptr.vmem [resolvable:$true] %s216_s17  ;;  %s219_s18 = int_to_ptr.hbm [resolvable:$true] %s218_s18 }
  0x22   : > { %s202_s9 = scalar_lea.sflag [#allocation4], %s573_s30  ;;  %s418_s22 = sshra.s32 %s219_s18, 4  ;;  %s419_s22 = int_to_ptr.hbm [resolvable:$true] %s418_s22 }
  0x23   : > { %v190_v4 = vsel %vm185_vm0, 2147483647, %v187_v1  ;;  %s420_s23 = scalar_lea.hbm %s419_s22, 8  ;;  %s424_s26 = scalar_lea.hbm %s621_s1, 16 }
  0x24   : > { %v195_v5 = vperm.slane %v190_v4, 0  ;;  %p421_p4 = scmp.ne.s32.totalorder %s419_s22, %s420_s23  ;;  %p425_p7 = scmp.lt.s32.totalorder %s419_s22, %s621_s1 }
  0x25   : > { %p426_p8 = scmp.lt.s32.totalorder %s424_s26, %s420_s23 }
  0x26   : > { %vm196_vm2 = vcmp.gt.s32.totalorder %v195_v5, %v192_v3  ;;  %p422_p5 = pnand %p421_p4, %p550_p9 }
  0x27   : > { %v306_v7 = vsel %vm196_vm2, 1.0, %v488_v6  ;;  %p427_p10 = por %p426_p8, %p425_p7 }
  0x28   : > { %200 = vst.msk [vmem:[%s155_s16] sm:$0xff] %vm199_vm1, %v306_v7  ;;  %p423_p6 = pneg %p422_p5 }
  0x2a   : > { %p428_p13 = pnand %p427_p10, %p423_p6 }
  0x2c   : > { %431 = shalt.err (!%p428_p13)
}
  0x2d   : > { %313 = dma.vmem_to_hbm [thread:$0]  (%p550_p9), %s217_s17, 128, %s219_s18, %s202_s9  }
  0x2e PF: > { %s230_s29 = sand.u32 1, %s466_s6   ;;  %p320_p0 = pnand %p302_p12, %p557_p11 }
  0x2f   : > { %s231_s30 = scalar_lea.sflag [#allocation4], %s230_s29 }
  0x30   : > { %p321_p1 = pneg %p320_p0 }
  0x32   : > { %461 = dma.done.wait (%p321_p1), %s231_s30, 128  }
  0x33   : > { %463 = vsyncadd (%p321_p1), %s231_s30, 4294967168  ;;  %s17_s11 = sadd.s32 1, %s486_s11   ;;  %s626_s6 = smov %s470_s7 }
  0x34   : > { %p14_p2 = scmp.ge.s32.totalorder %s17_s11, 4   ;;  %s627_s7 = smov %s474_s8 }
  0x35   : > { %s628_s8 = smov %s555_s20  ;;  %s629_s9 = smov %s482_s10 }
  0x36   : > { %s630_s10 = smov %s632_s14  ;;  %16 = sbr.rel (!%p14_p2) target bundleno = 6 (0x6), region = 81 }
  0x3b   :  { %237 = vsyncpa [#allocation3], 1 }
  0x3c   :  { %239 = vsyncpa [#allocation3 + $0x1], 1 }
  0x3d   :  { %240 = vsyncpa [#allocation4], 1 }
  0x3e   :  { %242 = vsyncpa [#allocation4 + $0x1], 1 }

</bundles_post_ra>
